<compile_context>
chip_gen: v6e
topology: v6e:2x2x1
jax: 0.10.0
libtpu: 0.0.40
codegen_flags: <defaults>
</compile_context>

<pallas_src>
import functools

import jax
import jax.numpy as jnp
from jax import lax
from jax.experimental import pallas as pl
from jax.experimental.pallas import tpu as pltpu


def receiver_dual_kernel(x_ref, mask_ref, omask_ref, msg_ref,
                         wpk_ref, gsr_ref, wfc_ref, out_ref,
                         *, heads, embedding_size):
    E, H = embedding_size, heads
    x = x_ref[...]                          # [N, F]   bf16 node features, all graphs
    mask_add = mask_ref[...]                # [N, N]   f32 (1-adj)*(-1e9), block-diagonal
    N = mask_add.shape[0]

    # One lane-dense bf16 MXU pass for every per-head projection (G | Q | K | V) plus the
    # folded GAT destination-attention columns; f32 accumulation.
    proj = jnp.dot(x, wpk_ref[...], preferred_element_type=jnp.float32)    # [N, 4HE+H]
    # Folded GAT source-attention rows: one tiny bf16 matmul for all heads.
    a_src_all = lax.dot_general(gsr_ref[...], x, (((1,), (1,)), ((), ())),
                                preferred_element_type=jnp.float32)        # [H, N]

    inv_sqrt_d = jnp.float32(1.0 / (E ** 0.5))

    def masked_softmax(e):
        # Row-max subtraction kept (XLU reduce, free slot) so exp() never overflows;
        # normalization via the EUP approximate reciprocal (free slot vs VPU divide).
        e = e + mask_add
        e = e - jnp.max(e, axis=-1, keepdims=True)
        p = jnp.exp(e)
        return p * pl.reciprocal(jnp.sum(p, axis=-1, keepdims=True), approx=True)

    # heads is tiny & static -> Python-unrolled; plain f32 SSA accumulation.
    acc = jnp.zeros((N, E), jnp.float32)
    for h in range(H):
        # ---------------- GAT head (GATConv-style, LeakyReLU 0.2) ----------------
        hg = proj[:, h * E:(h + 1) * E].astype(jnp.bfloat16)               # [N, E]
        a_dst = proj[:, 4 * H * E + h:4 * H * E + h + 1]                   # [N, 1]
        e = a_dst + a_src_all[h:h + 1, :]                                  # [N, N]
        e = jnp.where(e > 0, e, 0.2 * e)                                   # LeakyReLU(0.2)
        acc = acc + jnp.dot(masked_softmax(e).astype(jnp.bfloat16), hg,
                            preferred_element_type=jnp.float32)

        # ------------- Transform head (TransformerConv-style attention) ----------
        q = proj[:, (H + h) * E:(H + h + 1) * E].astype(jnp.bfloat16)
        k = proj[:, (2 * H + h) * E:(2 * H + h + 1) * E].astype(jnp.bfloat16)
        v = proj[:, (3 * H + h) * E:(3 * H + h + 1) * E].astype(jnp.bfloat16)
        s = lax.dot_general(q, k, (((1,), (1,)), ((), ())),
                            preferred_element_type=jnp.float32) * inv_sqrt_d
        acc = acc + jnp.dot(masked_softmax(s).astype(jnp.bfloat16), v,
                            preferred_element_type=jnp.float32)

    # heads-average of both streams.  (bg + bt) bias dropped: it contributes a per-graph
    # constant to the dot products, and log_softmax over nodes is exactly invariant to it.
    h_blk = acc * jnp.float32(1.0 / H)                                     # [N, E] f32

    # Epilogue kept in f32 (tiny matmuls, best accuracy).  Contracting on E yields the
    # [B, N] score slab directly in lane orientation -> one lane-dense store.
    msg_emb = jnp.dot(msg_ref[...], wfc_ref[...],
                      preferred_element_type=jnp.float32)                  # [B, E]
    scores = lax.dot_general(msg_emb, h_blk, (((1,), (1,)), ((), ())),
                             preferred_element_type=jnp.float32)           # [B, N]
    scores = scores + omask_ref[...]              # mask other graphs' nodes with -1e9

    # log_softmax over each graph's own nodes (masked columns underflow to 0).
    m = jnp.max(scores, axis=-1, keepdims=True)
    z = scores - m
    lse = jnp.log(jnp.sum(jnp.exp(z), axis=-1, keepdims=True))
    out_ref[...] = z - lse


def receiver_dual_forward(x, adj, message, params, *, heads, embedding_size,
                          hidden_size, batch_size):
    """params = (wg, asrc, adst, bg, wq, wk, wv, bt, wfc, bfc)."""
    wg, asrc, adst, bg, wq, wk, wv, bt, wfc, bfc = params
    N, F = x.shape
    H, E, B = heads, embedding_size, batch_size
    npg = N // B

    # ---------------- host-side packing / constant folding (done once) ----------------
    q16 = lambda a: a.astype(jnp.bfloat16).astype(jnp.float32)
    pack = lambda w: w.transpose(1, 0, 2).reshape(F, H * E)
    # Fold GAT attention vectors into the projection:
    #   a_dst_h(node) = (x @ wg[h]) @ adst[h]   == x @ (wg[h] @ adst[h])     -> extra columns
    #   a_src_h(node) = asrc[h] @ (x @ wg[h]).T == (asrc[h] @ wg[h].T) @ x.T -> tiny [H,F] weight
    gd = jnp.concatenate([q16(wg[h]) @ adst[h] for h in range(H)], axis=1)      # [F, H]
    gsr = jnp.concatenate([asrc[h] @ q16(wg[h]).T for h in range(H)], axis=0)   # [H, F]
    w_packed = jnp.concatenate([pack(wg), pack(wq), pack(wk), pack(wv), gd],
                               axis=-1).astype(jnp.bfloat16)                    # [F, 4HE+H]
    gsr = gsr.astype(jnp.bfloat16)

    x16 = x.astype(jnp.bfloat16)                                                # [N, F]
    mask_add = (1.0 - adj) * jnp.float32(-1e9)                                  # [N, N]
    own = jnp.kron(jnp.eye(B, dtype=jnp.float32),
                   jnp.ones((1, npg), jnp.float32))                             # [B, N]
    out_mask_add = (1.0 - own) * jnp.float32(-1e9)
    msg_aug = jnp.concatenate([message, jnp.ones((B, 1), message.dtype)], axis=1)
    wfc_aug = jnp.concatenate([wfc, bfc], axis=0)                               # [hid+1, E]
    # bg / bt intentionally not passed: exactly cancelled by the final log_softmax.
    del bg, bt

    kernel = functools.partial(receiver_dual_kernel, heads=H, embedding_size=E)
    inputs = (x16, mask_add, out_mask_add, msg_aug, w_packed, gsr, wfc_aug)
    full = lambda a: pl.BlockSpec(a.shape, lambda i: (0,) * a.ndim)

    cost = pl.CostEstimate(
        flops=int(2 * N * F * (4 * H * E + H)        # packed projections (+ folded a_dst)
                  + 2 * H * F * N                     # folded a_src rows
                  + H * 3 * 2 * N * N * E             # attn scores + 2 aggregations / head
                  + 2 * B * (hidden_size + 1) * E     # message embedding (fc)
                  + 2 * B * N * E),                   # epilogue per-node dot products
        transcendentals=int(2 * H * N * N + 2 * H * N + B * N + B),
        bytes_accessed=int(sum(a.size * a.dtype.itemsize for a in inputs) + B * N * 4))

    out = pl.pallas_call(
        kernel,
        out_shape=jax.ShapeDtypeStruct((B, N), jnp.float32),
        grid=(1,),                                    # single fused step for all graphs
        in_specs=[full(a) for a in inputs],
        out_specs=pl.BlockSpec((B, N), lambda i: (0, 0)),
        cost_estimate=cost,
    )(*inputs)

    # Each graph's own-block of the [B, N] slab is its log-probability row.
    return out.reshape(B, B, npg)[jnp.arange(B), jnp.arange(B)]


def receiver_dual_reference(x, adj, message, params, *, heads, embedding_size,
                            hidden_size, batch_size):
    """Pure-JAX reference; mirrors the kernel's bf16 rounding of the stored MXU weights."""
    wg, asrc, adst, bg, wq, wk, wv, bt, wfc, bfc = params
    E = embedding_size
    N = x.shape[0]
    npg = N // batch_size
    q16 = lambda a: a.astype(jnp.bfloat16).astype(jnp.float32)
    xq = q16(x)
    wgq, wqq, wkq, wvq = q16(wg), q16(wq), q16(wk), q16(wv)

    mask_add = (1.0 - adj) * jnp.float32(-1e9)

    def msoftmax(e):
        e = e + mask_add
        e = e - jnp.max(e, axis=-1, keepdims=True)
        p = jnp.exp(e)
        return p / jnp.sum(p, axis=-1, keepdims=True)

    hg_sum = jnp.zeros((N, E), jnp.float32)
    ht_sum = jnp.zeros((N, E), jnp.float32)
    for h in range(heads):
        hg = xq @ wgq[h]
        e = hg @ adst[h] + asrc[h] @ hg.T
        e = jnp.where(e > 0, e, 0.2 * e)
        hg_sum = hg_sum + msoftmax(e) @ hg
        q, k, v = xq @ wqq[h], xq @ wkq[h], xq @ wvq[h]
        s = (q @ k.T) / jnp.sqrt(jnp.float32(E))
        ht_sum = ht_sum + msoftmax(s) @ v
    h_all = (hg_sum / heads + bg) + (ht_sum / heads + bt)          # [N, E]

    h_view = h_all.reshape(batch_size, npg, E)
    msg_emb = message @ wfc + bfc                                   # [B, E]
    dots = jnp.einsum('bne,be->bn', h_view, msg_emb)                # [B, npg]
    return jax.nn.log_softmax(dots, axis=1)


if __name__ == "__main__":
    # Small, forward-consistent shapes.
    B, nodes_per_graph = 2, 8
    N = B * nodes_per_graph
    num_node_features = 8
    embedding_size = 32
    heads = 2
    hidden_size = 32

    key = jax.random.PRNGKey(0)
    ks = jax.random.split(key, 16)

    # Node features (data.x).
    x = jax.random.normal(ks[0], (N, num_node_features), jnp.float32)

    # Block-diagonal adjacency (B independent graphs) with self-loops.
    adj = jnp.zeros((N, N), jnp.float32)
    for b in range(B):
        blk = (jax.random.uniform(ks[1 + b], (nodes_per_graph, nodes_per_graph)) < 0.4
               ).astype(jnp.float32)
        adj = adj.at[b * nodes_per_graph:(b + 1) * nodes_per_graph,
                     b * nodes_per_graph:(b + 1) * nodes_per_graph].set(blk)
    adj = jnp.maximum(adj, jnp.eye(N, dtype=jnp.float32))

    # Incoming message (forward arg `message`), one row per graph.
    message = jax.random.normal(ks[3], (B, hidden_size), jnp.float32)

    # Deterministic parameter init (synthetic, not a checkpoint).
    s = 0.2
    wg   = s * jax.random.normal(ks[4], (heads, num_node_features, embedding_size), jnp.float32)
    asrc = s * jax.random.normal(ks[5], (heads, 1, embedding_size), jnp.float32)   # per-head row vec
    adst = s * jax.random.normal(ks[6], (heads, embedding_size, 1), jnp.float32)   # per-head col vec
    bg   = s * jax.random.normal(ks[7], (1, embedding_size), jnp.float32)
    wq   = s * jax.random.normal(ks[8], (heads, num_node_features, embedding_size), jnp.float32)
    wk   = s * jax.random.normal(ks[9], (heads, num_node_features, embedding_size), jnp.float32)
    wv   = s * jax.random.normal(ks[10], (heads, num_node_features, embedding_size), jnp.float32)
    bt   = s * jax.random.normal(ks[11], (1, embedding_size), jnp.float32)
    wfc  = s * jax.random.normal(ks[12], (hidden_size, embedding_size), jnp.float32)  # fc: hidden -> E
    bfc  = s * jax.random.normal(ks[13], (1, embedding_size), jnp.float32)
    params = (wg, asrc, adst, bg, wq, wk, wv, bt, wfc, bfc)

    out = receiver_dual_forward(x, adj, message, params, heads=heads,
                                embedding_size=embedding_size,
                                hidden_size=hidden_size, batch_size=B)
    out = jax.block_until_ready(out)

    ref = receiver_dual_reference(x, adj, message, params, heads=heads,
                                  embedding_size=embedding_size,
                                  hidden_size=hidden_size, batch_size=B)
    assert out.shape == (B, nodes_per_graph), out.shape
    # Tolerance covers the kernel-internal bf16 casts of the attention/aggregation operands
    # (probabilities, hg, q, k, v), the folded attention columns, and the EUP approximate
    # reciprocal in the attention softmax; the reference mirrors only the bf16 weight storage.
    assert jnp.allclose(out, ref, atol=5e-2, rtol=1e-3), (out, ref)
    # Sanity: each row is a valid log-probability distribution.
    assert jnp.allclose(jnp.sum(jnp.exp(out), axis=1), 1.0, atol=1e-3), out
    print("KERNEL_OK")
</pallas_src>

<mosaic_0001>
module attributes {stable_mosaic.version = 11 : i64} {
  func.func @receiver_dual_kernel(%arg0: i32, %arg1: memref<16x8xbf16, #tpu.memory_space<vmem>>, %arg2: memref<16x16xf32, #tpu.memory_space<vmem>>, %arg3: memref<2x16xf32, #tpu.memory_space<vmem>>, %arg4: memref<2x33xf32, #tpu.memory_space<vmem>>, %arg5: memref<8x258xbf16, #tpu.memory_space<vmem>>, %arg6: memref<2x8xbf16, #tpu.memory_space<vmem>>, %arg7: memref<33x32xf32, #tpu.memory_space<vmem>>, %arg8: memref<2x16xf32, #tpu.memory_space<vmem>>) attributes {dimension_semantics = [#tpu.dimension_semantics<arbitrary>], iteration_bounds = array<i64: 1>, scalar_prefetch = 0 : i64, scratch_operands = 0 : i64, tpu.core_type = #tpu.core_type<tc>, window_params = [{pipeline_mode = #tpu.pipeline_mode<synchronous>, transform_indices = @transform_0, window_bounds = array<i64: 16, 8>}, {pipeline_mode = #tpu.pipeline_mode<synchronous>, transform_indices = @transform_1, window_bounds = array<i64: 16, 16>}, {pipeline_mode = #tpu.pipeline_mode<synchronous>, transform_indices = @transform_2, window_bounds = array<i64: 2, 16>}, {pipeline_mode = #tpu.pipeline_mode<synchronous>, transform_indices = @transform_3, window_bounds = array<i64: 2, 33>}, {pipeline_mode = #tpu.pipeline_mode<synchronous>, transform_indices = @transform_4, window_bounds = array<i64: 8, 258>}, {pipeline_mode = #tpu.pipeline_mode<synchronous>, transform_indices = @transform_5, window_bounds = array<i64: 2, 8>}, {pipeline_mode = #tpu.pipeline_mode<synchronous>, transform_indices = @transform_6, window_bounds = array<i64: 33, 32>}, {pipeline_mode = #tpu.pipeline_mode<synchronous>, transform_indices = @transform_7, window_bounds = array<i64: 2, 16>}]} {
    %c0 = arith.constant 0 : index
    %c0_0 = arith.constant 0 : index
    %0 = vector.load %arg1[%c0, %c0_0] : memref<16x8xbf16, #tpu.memory_space<vmem>>, vector<16x8xbf16>
    %c0_1 = arith.constant 0 : index
    %c0_2 = arith.constant 0 : index
    %1 = vector.load %arg2[%c0_1, %c0_2] : memref<16x16xf32, #tpu.memory_space<vmem>>, vector<16x16xf32>
    %c0_3 = arith.constant 0 : index
    %c0_4 = arith.constant 0 : index
    %2 = vector.load %arg5[%c0_3, %c0_4] : memref<8x258xbf16, #tpu.memory_space<vmem>>, vector<8x258xbf16>
    %cst = arith.constant dense<0.000000e+00> : vector<16x258xf32>
    %3 = tpu.matmul %0, %2, %cst {dimension_numbers = #tpu.dot_dimension_numbers<[1], [0], [0], [1], [0, 0, 1, 1], [], []>} : vector<16x8xbf16>, vector<8x258xbf16>, vector<16x258xf32> -> vector<16x258xf32>
    %c0_5 = arith.constant 0 : index
    %c0_6 = arith.constant 0 : index
    %4 = vector.load %arg6[%c0_5, %c0_6] : memref<2x8xbf16, #tpu.memory_space<vmem>>, vector<2x8xbf16>
    %cst_7 = arith.constant dense<0.000000e+00> : vector<2x16xf32>
    %5 = tpu.matmul %4, %0, %cst_7 {dimension_numbers = #tpu.dot_dimension_numbers<[1], [1], [0], [0], [0, 0, 1, 0], [], []>} : vector<2x8xbf16>, vector<16x8xbf16>, vector<2x16xf32> -> vector<2x16xf32>
    %cst_8 = arith.constant 0.000000e+00 : f32
    %6 = vector.broadcast %cst_8 : f32 to vector<16x32xf32>
    %7 = vector.extract_strided_slice %3 {offsets = [0, 0], sizes = [16, 32], strides = [1, 1]} : vector<16x258xf32> to vector<16x32xf32>
    %8 = arith.truncf %7 : vector<16x32xf32> to vector<16x32xbf16>
    %9 = vector.extract_strided_slice %3 {offsets = [0, 256], sizes = [16, 1], strides = [1, 1]} : vector<16x258xf32> to vector<16x1xf32>
    %10 = vector.extract_strided_slice %5 {offsets = [0, 0], sizes = [1, 16], strides = [1, 1]} : vector<2x16xf32> to vector<1x16xf32>
    %11 = vector.broadcast %9 : vector<16x1xf32> to vector<16x16xf32>
    %12 = vector.broadcast %10 : vector<1x16xf32> to vector<16x16xf32>
    %13 = arith.addf %11, %12 : vector<16x16xf32>
    %cst_9 = arith.constant 0.000000e+00 : f32
    %14 = vector.broadcast %cst_9 : f32 to vector<16x16xf32>
    %15 = arith.cmpf ogt, %13, %14 : vector<16x16xf32>
    %cst_10 = arith.constant 2.000000e-01 : f32
    %16 = vector.broadcast %cst_10 : f32 to vector<16x16xf32>
    %17 = arith.mulf %16, %13 : vector<16x16xf32>
    %18 = arith.select %15, %13, %17 : vector<16x16xi1>, vector<16x16xf32>
    %19 = arith.addf %18, %1 : vector<16x16xf32>
    %cst_11 = arith.constant dense<0xFF800000> : vector<16xf32>
    %20 = vector.multi_reduction <maximumf>, %19, %cst_11 [1] : vector<16x16xf32> to vector<16xf32>
    %21 = vector.shape_cast %20 : vector<16xf32> to vector<16x1xf32>
    %22 = vector.broadcast %21 : vector<16x1xf32> to vector<16x16xf32>
    %23 = arith.subf %19, %22 : vector<16x16xf32>
    %24 = math.exp %23 : vector<16x16xf32>
    %cst_12 = arith.constant dense<0.000000e+00> : vector<16xf32>
    %25 = vector.multi_reduction <add>, %24, %cst_12 [1] : vector<16x16xf32> to vector<16xf32>
    %26 = vector.shape_cast %25 : vector<16xf32> to vector<16x1xf32>
    %27 = tpu.reciprocal %26 {approx = true} : vector<16x1xf32> -> vector<16x1xf32>
    %28 = vector.broadcast %27 : vector<16x1xf32> to vector<16x16xf32>
    %29 = arith.mulf %24, %28 : vector<16x16xf32>
    %30 = arith.truncf %29 : vector<16x16xf32> to vector<16x16xbf16>
    %cst_13 = arith.constant dense<0.000000e+00> : vector<16x32xf32>
    %31 = tpu.matmul %30, %8, %cst_13 {dimension_numbers = #tpu.dot_dimension_numbers<[1], [0], [0], [1], [0, 0, 1, 1], [], []>} : vector<16x16xbf16>, vector<16x32xbf16>, vector<16x32xf32> -> vector<16x32xf32>
    %32 = arith.addf %6, %31 : vector<16x32xf32>
    %33 = vector.extract_strided_slice %3 {offsets = [0, 64], sizes = [16, 32], strides = [1, 1]} : vector<16x258xf32> to vector<16x32xf32>
    %34 = arith.truncf %33 : vector<16x32xf32> to vector<16x32xbf16>
    %35 = vector.extract_strided_slice %3 {offsets = [0, 128], sizes = [16, 32], strides = [1, 1]} : vector<16x258xf32> to vector<16x32xf32>
    %36 = arith.truncf %35 : vector<16x32xf32> to vector<16x32xbf16>
    %37 = vector.extract_strided_slice %3 {offsets = [0, 192], sizes = [16, 32], strides = [1, 1]} : vector<16x258xf32> to vector<16x32xf32>
    %38 = arith.truncf %37 : vector<16x32xf32> to vector<16x32xbf16>
    %cst_14 = arith.constant dense<0.000000e+00> : vector<16x16xf32>
    %39 = tpu.matmul %34, %36, %cst_14 {dimension_numbers = #tpu.dot_dimension_numbers<[1], [1], [0], [0], [0, 0, 1, 0], [], []>} : vector<16x32xbf16>, vector<16x32xbf16>, vector<16x16xf32> -> vector<16x16xf32>
    %cst_15 = arith.constant 0.176776692 : f32
    %40 = vector.broadcast %cst_15 : f32 to vector<16x16xf32>
    %41 = arith.mulf %39, %40 : vector<16x16xf32>
    %42 = arith.addf %41, %1 : vector<16x16xf32>
    %cst_16 = arith.constant dense<0xFF800000> : vector<16xf32>
    %43 = vector.multi_reduction <maximumf>, %42, %cst_16 [1] : vector<16x16xf32> to vector<16xf32>
    %44 = vector.shape_cast %43 : vector<16xf32> to vector<16x1xf32>
    %45 = vector.broadcast %44 : vector<16x1xf32> to vector<16x16xf32>
    %46 = arith.subf %42, %45 : vector<16x16xf32>
    %47 = math.exp %46 : vector<16x16xf32>
    %cst_17 = arith.constant dense<0.000000e+00> : vector<16xf32>
    %48 = vector.multi_reduction <add>, %47, %cst_17 [1] : vector<16x16xf32> to vector<16xf32>
    %49 = vector.shape_cast %48 : vector<16xf32> to vector<16x1xf32>
    %50 = tpu.reciprocal %49 {approx = true} : vector<16x1xf32> -> vector<16x1xf32>
    %51 = vector.broadcast %50 : vector<16x1xf32> to vector<16x16xf32>
    %52 = arith.mulf %47, %51 : vector<16x16xf32>
    %53 = arith.truncf %52 : vector<16x16xf32> to vector<16x16xbf16>
    %cst_18 = arith.constant dense<0.000000e+00> : vector<16x32xf32>
    %54 = tpu.matmul %53, %38, %cst_18 {dimension_numbers = #tpu.dot_dimension_numbers<[1], [0], [0], [1], [0, 0, 1, 1], [], []>} : vector<16x16xbf16>, vector<16x32xbf16>, vector<16x32xf32> -> vector<16x32xf32>
    %55 = arith.addf %32, %54 : vector<16x32xf32>
    %56 = vector.extract_strided_slice %3 {offsets = [0, 32], sizes = [16, 32], strides = [1, 1]} : vector<16x258xf32> to vector<16x32xf32>
    %57 = arith.truncf %56 : vector<16x32xf32> to vector<16x32xbf16>
    %58 = vector.extract_strided_slice %3 {offsets = [0, 257], sizes = [16, 1], strides = [1, 1]} : vector<16x258xf32> to vector<16x1xf32>
    %59 = vector.extract_strided_slice %5 {offsets = [1, 0], sizes = [1, 16], strides = [1, 1]} : vector<2x16xf32> to vector<1x16xf32>
    %60 = vector.broadcast %58 : vector<16x1xf32> to vector<16x16xf32>
    %61 = vector.broadcast %59 : vector<1x16xf32> to vector<16x16xf32>
    %62 = arith.addf %60, %61 : vector<16x16xf32>
    %cst_19 = arith.constant 0.000000e+00 : f32
    %63 = vector.broadcast %cst_19 : f32 to vector<16x16xf32>
    %64 = arith.cmpf ogt, %62, %63 : vector<16x16xf32>
    %cst_20 = arith.constant 2.000000e-01 : f32
    %65 = vector.broadcast %cst_20 : f32 to vector<16x16xf32>
    %66 = arith.mulf %65, %62 : vector<16x16xf32>
    %67 = arith.select %64, %62, %66 : vector<16x16xi1>, vector<16x16xf32>
    %68 = arith.addf %67, %1 : vector<16x16xf32>
    %cst_21 = arith.constant dense<0xFF800000> : vector<16xf32>
    %69 = vector.multi_reduction <maximumf>, %68, %cst_21 [1] : vector<16x16xf32> to vector<16xf32>
    %70 = vector.shape_cast %69 : vector<16xf32> to vector<16x1xf32>
    %71 = vector.broadcast %70 : vector<16x1xf32> to vector<16x16xf32>
    %72 = arith.subf %68, %71 : vector<16x16xf32>
    %73 = math.exp %72 : vector<16x16xf32>
    %cst_22 = arith.constant dense<0.000000e+00> : vector<16xf32>
    %74 = vector.multi_reduction <add>, %73, %cst_22 [1] : vector<16x16xf32> to vector<16xf32>
    %75 = vector.shape_cast %74 : vector<16xf32> to vector<16x1xf32>
    %76 = tpu.reciprocal %75 {approx = true} : vector<16x1xf32> -> vector<16x1xf32>
    %77 = vector.broadcast %76 : vector<16x1xf32> to vector<16x16xf32>
    %78 = arith.mulf %73, %77 : vector<16x16xf32>
    %79 = arith.truncf %78 : vector<16x16xf32> to vector<16x16xbf16>
    %cst_23 = arith.constant dense<0.000000e+00> : vector<16x32xf32>
    %80 = tpu.matmul %79, %57, %cst_23 {dimension_numbers = #tpu.dot_dimension_numbers<[1], [0], [0], [1], [0, 0, 1, 1], [], []>} : vector<16x16xbf16>, vector<16x32xbf16>, vector<16x32xf32> -> vector<16x32xf32>
    %81 = arith.addf %55, %80 : vector<16x32xf32>
    %82 = vector.extract_strided_slice %3 {offsets = [0, 96], sizes = [16, 32], strides = [1, 1]} : vector<16x258xf32> to vector<16x32xf32>
    %83 = arith.truncf %82 : vector<16x32xf32> to vector<16x32xbf16>
    %84 = vector.extract_strided_slice %3 {offsets = [0, 160], sizes = [16, 32], strides = [1, 1]} : vector<16x258xf32> to vector<16x32xf32>
    %85 = arith.truncf %84 : vector<16x32xf32> to vector<16x32xbf16>
    %86 = vector.extract_strided_slice %3 {offsets = [0, 224], sizes = [16, 32], strides = [1, 1]} : vector<16x258xf32> to vector<16x32xf32>
    %87 = arith.truncf %86 : vector<16x32xf32> to vector<16x32xbf16>
    %cst_24 = arith.constant dense<0.000000e+00> : vector<16x16xf32>
    %88 = tpu.matmul %83, %85, %cst_24 {dimension_numbers = #tpu.dot_dimension_numbers<[1], [1], [0], [0], [0, 0, 1, 0], [], []>} : vector<16x32xbf16>, vector<16x32xbf16>, vector<16x16xf32> -> vector<16x16xf32>
    %cst_25 = arith.constant 0.176776692 : f32
    %89 = vector.broadcast %cst_25 : f32 to vector<16x16xf32>
    %90 = arith.mulf %88, %89 : vector<16x16xf32>
    %91 = arith.addf %90, %1 : vector<16x16xf32>
    %cst_26 = arith.constant dense<0xFF800000> : vector<16xf32>
    %92 = vector.multi_reduction <maximumf>, %91, %cst_26 [1] : vector<16x16xf32> to vector<16xf32>
    %93 = vector.shape_cast %92 : vector<16xf32> to vector<16x1xf32>
    %94 = vector.broadcast %93 : vector<16x1xf32> to vector<16x16xf32>
    %95 = arith.subf %91, %94 : vector<16x16xf32>
    %96 = math.exp %95 : vector<16x16xf32>
    %cst_27 = arith.constant dense<0.000000e+00> : vector<16xf32>
    %97 = vector.multi_reduction <add>, %96, %cst_27 [1] : vector<16x16xf32> to vector<16xf32>
    %98 = vector.shape_cast %97 : vector<16xf32> to vector<16x1xf32>
    %99 = tpu.reciprocal %98 {approx = true} : vector<16x1xf32> -> vector<16x1xf32>
    %100 = vector.broadcast %99 : vector<16x1xf32> to vector<16x16xf32>
    %101 = arith.mulf %96, %100 : vector<16x16xf32>
    %102 = arith.truncf %101 : vector<16x16xf32> to vector<16x16xbf16>
    %cst_28 = arith.constant dense<0.000000e+00> : vector<16x32xf32>
    %103 = tpu.matmul %102, %87, %cst_28 {dimension_numbers = #tpu.dot_dimension_numbers<[1], [0], [0], [1], [0, 0, 1, 1], [], []>} : vector<16x16xbf16>, vector<16x32xbf16>, vector<16x32xf32> -> vector<16x32xf32>
    %104 = arith.addf %81, %103 : vector<16x32xf32>
    %cst_29 = arith.constant 5.000000e-01 : f32
    %105 = vector.broadcast %cst_29 : f32 to vector<16x32xf32>
    %106 = arith.mulf %104, %105 : vector<16x32xf32>
    %c0_30 = arith.constant 0 : index
    %c0_31 = arith.constant 0 : index
    %107 = vector.load %arg4[%c0_30, %c0_31] : memref<2x33xf32, #tpu.memory_space<vmem>>, vector<2x33xf32>
    %c0_32 = arith.constant 0 : index
    %c0_33 = arith.constant 0 : index
    %108 = vector.load %arg7[%c0_32, %c0_33] : memref<33x32xf32, #tpu.memory_space<vmem>>, vector<33x32xf32>
    %cst_34 = arith.constant dense<0.000000e+00> : vector<2x32xf32>
    %109 = tpu.matmul %107, %108, %cst_34 {dimension_numbers = #tpu.dot_dimension_numbers<[1], [0], [0], [1], [0, 0, 1, 1], [], []>} : vector<2x33xf32>, vector<33x32xf32>, vector<2x32xf32> -> vector<2x32xf32>
    %cst_35 = arith.constant dense<0.000000e+00> : vector<2x16xf32>
    %110 = tpu.matmul %109, %106, %cst_35 {dimension_numbers = #tpu.dot_dimension_numbers<[1], [1], [0], [0], [0, 0, 1, 0], [], []>} : vector<2x32xf32>, vector<16x32xf32>, vector<2x16xf32> -> vector<2x16xf32>
    %c0_36 = arith.constant 0 : index
    %c0_37 = arith.constant 0 : index
    %111 = vector.load %arg3[%c0_36, %c0_37] : memref<2x16xf32, #tpu.memory_space<vmem>>, vector<2x16xf32>
    %112 = arith.addf %110, %111 : vector<2x16xf32>
    %cst_38 = arith.constant dense<0xFF800000> : vector<2xf32>
    %113 = vector.multi_reduction <maximumf>, %112, %cst_38 [1] : vector<2x16xf32> to vector<2xf32>
    %114 = vector.shape_cast %113 : vector<2xf32> to vector<2x1xf32>
    %115 = vector.broadcast %114 : vector<2x1xf32> to vector<2x16xf32>
    %116 = arith.subf %112, %115 : vector<2x16xf32>
    %117 = math.exp %116 : vector<2x16xf32>
    %cst_39 = arith.constant dense<0.000000e+00> : vector<2xf32>
    %118 = vector.multi_reduction <add>, %117, %cst_39 [1] : vector<2x16xf32> to vector<2xf32>
    %119 = vector.shape_cast %118 : vector<2xf32> to vector<2x1xf32>
    %120 = math.log %119 : vector<2x1xf32>
    %121 = vector.broadcast %120 : vector<2x1xf32> to vector<2x16xf32>
    %122 = arith.subf %116, %121 : vector<2x16xf32>
    %c0_40 = arith.constant 0 : index
    %c0_41 = arith.constant 0 : index
    %123 = vector.load %arg8[%c0_40, %c0_41] : memref<2x16xf32, #tpu.memory_space<vmem>>, vector<2x16xf32>
    tpu.vector_store %arg8[%c0_40, %c0_41], %122 {strides = array<i32>} : memref<2x16xf32, #tpu.memory_space<vmem>>, vector<2x16xf32>,
    return
  }
  func.func @transform_0(%arg0: i32) -> (i32, i32) {
    %c0_i32 = arith.constant 0 : i32
    %c0_i32_0 = arith.constant 0 : i32
    %c0_i32_1 = arith.constant 0 : i32
    return %c0_i32, %c0_i32_0 : i32, i32
  }
  func.func @transform_1(%arg0: i32) -> (i32, i32) {
    %c0_i32 = arith.constant 0 : i32
    %c0_i32_0 = arith.constant 0 : i32
    %c0_i32_1 = arith.constant 0 : i32
    return %c0_i32, %c0_i32_0 : i32, i32
  }
  func.func @transform_2(%arg0: i32) -> (i32, i32) {
    %c0_i32 = arith.constant 0 : i32
    %c0_i32_0 = arith.constant 0 : i32
    %c0_i32_1 = arith.constant 0 : i32
    return %c0_i32, %c0_i32_0 : i32, i32
  }
  func.func @transform_3(%arg0: i32) -> (i32, i32) {
    %c0_i32 = arith.constant 0 : i32
    %c0_i32_0 = arith.constant 0 : i32
    %c0_i32_1 = arith.constant 0 : i32
    return %c0_i32, %c0_i32_0 : i32, i32
  }
  func.func @transform_4(%arg0: i32) -> (i32, i32) {
    %c0_i32 = arith.constant 0 : i32
    %c0_i32_0 = arith.constant 0 : i32
    %c0_i32_1 = arith.constant 0 : i32
    return %c0_i32, %c0_i32_0 : i32, i32
  }
  func.func @transform_5(%arg0: i32) -> (i32, i32) {
    %c0_i32 = arith.constant 0 : i32
    %c0_i32_0 = arith.constant 0 : i32
    %c0_i32_1 = arith.constant 0 : i32
    return %c0_i32, %c0_i32_0 : i32, i32
  }
  func.func @transform_6(%arg0: i32) -> (i32, i32) {
    %c0_i32 = arith.constant 0 : i32
    %c0_i32_0 = arith.constant 0 : i32
    %c0_i32_1 = arith.constant 0 : i32
    return %c0_i32, %c0_i32_0 : i32, i32
  }
  func.func @transform_7(%arg0: i32) -> (i32, i32) {
    %c0_i32 = arith.constant 0 : i32
    %c0_i32_0 = arith.constant 0 : i32
    %c0_i32_1 = arith.constant 0 : i32
    return %c0_i32, %c0_i32_0 : i32, i32
  }
}

</mosaic_0001>

<bundles_post_ra>
// kernel: tpu_custom_call.1
= control target key start
LH: loop header
LB: loop body
LE: loop exit
PB: predicated region body
PF: predicated region fallthrough
CT: control target
= control target key end

     0   :  { %vm51_vm0 = vcmask 1043456   ;;  %v1009_v1 = vmov 0.0   ;;  %vm1010_vm1 = vmmov 0   ;;  %vm47_vm2 = vcmask 64512   ;;  %s1223_s0 = inlined_call_operand.vmem [shape: bf16[16,8], index: 0, kind: input, shape index: {}]   ;;  %s1224_s1 = inlined_call_operand.vmem [shape: f32[16,16], index: 1, kind: input, shape index: {}]   ;;  %s1225_s2 = inlined_call_operand.vmem [shape: f32[2,16], index: 2, kind: input, shape index: {}]   ;;  %s1226_s3 = inlined_call_operand.vmem [shape: f32[2,33], index: 3, kind: input, shape index: {}]   ;;  %s1227_s4 = inlined_call_operand.vmem [shape: bf16[8,258], index: 4, kind: input, shape index: {}]   ;;  %s1228_s5 = inlined_call_operand.vmem [shape: bf16[2,8], index: 5, kind: input, shape index: {}]   ;;  %s1229_s6 = inlined_call_operand.vmem [shape: f32[33,32], index: 6, kind: input, shape index: {}]   ;;  %s1230_s7 = inlined_call_operand.hbm [shape: f32[2,16], index: 7, kind: output, shape index: {}]  }
   0x1   :  { %v947_v0 = vld [vmem:[%s1227_s4 + $0x8] ss:$0 sps:$4 sm:$0xff]   ;;  %868 = vmatprep.subr.bf16.mxu1 %v1009_v1  ;;  %870 = vmatprep.mubr.msk.bf16.mxu1 %vm1010_vm1, %v1009_v1  ;;  %v948_v3 = vld [vmem:[%s1223_s0] sm:$0xff]   ;;  %v1011_v7 = vmov 0  }
   0x2   :  { %v59_v2 = vsel %vm51_vm0, %v947_v0, 0  ;;  %v32_v4 = vld [vmem:[%s1227_s4] sm:$0xff]  ;;  %93 = vmatprep.mubr.bf16.mxu0 %v1011_v7 }
   0x3   :  { %869 = vmatpush3.bf16.msra.mxu1 %v59_v2  ;;  %v826_v5 = vcombine.high %v32_v4, %v32_v4  ;;  %v825_v6 = vcombine.low %v32_v4, %v32_v4 }
   0x4   :  { %12 = vsyncpa [#allocation3], 0  ;;  %944 = vset.pattern.permute.xlu0 %v1011_v7  ;;  %880 = vmatprep.subr.bf16.mxu1 %v1009_v1  ;;  %v49_v9 = vsel %vm47_vm2, %v948_v3, 0  ;;  %v145_v10 = vld [vmem:[%s1228_s5] sm:$0x1]  ;;  %v200_v12 = vlaneseq  ;;  %vm242_vm3 = vcmask 261120  }
   0x5   :  { %828 = vmatprep.subr.msk.bf16.mxu0 %vm51_vm0, %v826_v5  ;;  %v53_v8 = vsel %vm51_vm0, %v825_v6, 0  ;;  %v1106_v35 = vld [vmem:[%s1224_s1] sm:$0xff]  ;;  %vm214_vm5 = vcmask 130048   ;;  %v1112_v41 = vld [vmem:[%s1224_s1 + $0x8] sm:$0xff]  ;;  %s1012_s10 = smov 64   ;;  %v1013_v46 = vmov 1  }
   0x6   :  { %871 = vmatmul.mubr.msk.bf16.vlgmr.msra.gmra.mxu1 %vm47_vm2, %v948_v3  ;;  %76 = vmatpush1.bf16.msra.mxu0 %v53_v8  ;;  %v201_v16 = vshrl.u32 %v200_v12, 7  ;;  %s1014_s1 = smov 96   ;;  %s1015_s11 = smov 32   ;;  %vm642_vm9 = vcmask 1040384   ;;  %vm638_vm10 = vcmask 269312   ;;  %vm796_vm11 = vcmask 123904  }
   0x7   :  { %874 = vmatprep.subr.bf16.mxu0 %v1009_v1  ;;  %882 = vmatprep.mubr.msk.bf16.mxu1 %vm1010_vm1, %v1009_v1  ;;  %s1016_s24 = smov [#allocation2]  }
   0x8   :  { %v419_v21 = vsub.s32 1, %v201_v16  ;;  %v202_v30 = vsub.s32 0, %v201_v16  ;;  %945 = vset.pattern.permute.xlu1 %v1013_v46 }
   0x9   :  { %829 = vmatmul.mubr.msk.bf16.vlgmr.msra.gmra.mxu0 %vm47_vm2, %v948_v3 }
   0xa   :  { %875 = vmatpush3.bf16.xpose.msra.mxu0 %v49_v9  ;;  %876 = vmatprep.mubr.msk.bf16.mxu0 %vm1010_vm1, %v1009_v1 }
   0xb   :  { %886 = vmatprep.subr.bf16.mxu0 %v1009_v1 }
  0x11   :  { %877 = vmatmul.mubr.msk.bf16.vlgmr.msra.gmra.mxu0 %vm47_vm2, %v145_v10 }
  0x12   :  { %888 = vmatprep.mubr.msk.bf16.mxu0 %vm1010_vm1, %v1009_v1 }
  0xc6   :  { %v1088_v11 = vpop.f32.mrf.mxu1 }
  0xc7   :  { %192 = vperm.xlu0 %944, %v1088_v11  }
  0xc8   :  { %v872_v13 = vpop.f32.mrf.mxu1 }
  0xc9   :  { %v95_v14 = vpop.f32.mrf.mxu0 }
  0xca   :  { %v1091_v15 = vpop.f32.mrf.mxu1 }
  0xcb   :  { %197 = vperm.xlu0 %944, %v1091_v15   ;;  %v97_v17 = vpop.f32.mrf.mxu0 }
  0xcc   :  { %v873_v18 = vpop.f32.mrf.mxu1 }
  0xcd   :  { %v99_v19 = vpop.f32.mrf.mxu0 }
  0xce   :  { %v1094_v20 = vpack.c.bf16 %v99_v19, %v95_v14 }
  0xcf   :  { %v101_v22 = vpop.f32.mrf.mxu0  ;;  %946 = vset.pattern.permute.xlu0 %v1013_v46 }
  0xd0   :  { %v1096_v23 = vpack.c.bf16 %v101_v22, %v97_v17 }
  0xd1   :  { %v183_v24 = vpop.f32.mrf.mxu0 }
  0xd2   :  { %v1098_v25 = vrot.slane %v183_v24, %v419_v21  ;;  %v247_v26 = vsel %vm242_vm3, %v1096_v23, 0  ;;  %v203_v31 = vrot.slane %v183_v24, %v202_v30 }
  0xd3   :  { %v878_v27 = vpop.f32.mrf.mxu0  ;;  %881 = vmatpush3.bf16.xpose.msra.mxu1 %v247_v26 }
  0xd4   :  { %892 = vmatprep.subr.bf16.mxu1 %v1009_v1 }
  0xd5   :  { %v186_v28 = vpop.f32.mrf.mxu0 }
  0xd7   :  { %v879_v29 = vpop.f32.mrf.mxu0 }
 0x142   :  { %v193_v32 = vpop.permute.xlu0 %192 }
 0x143   :  { %v204_v33 = vadd.f32 %v203_v31, %v193_v32 }
 0x145   :  { %v208_v34 = vmul.f32 0.2, %v204_v33  ;;  %vm206_vm4 = vcmp.gt.f32.partialorder %v204_v33, 0.0 }
 0x146   :  { %v198_v36 = vpop.permute.xlu0 %197 }
 0x147   :  { %v205_v37 = vadd.f32 %v203_v31, %v198_v36  ;;  %v210_v38 = vsel %vm206_vm4, %v204_v33, %v208_v34 }
 0x148   :  { %v212_v39 = vadd.f32 %v210_v38, %v1106_v35 }
 0x149   :  { %vm207_vm6 = vcmp.gt.f32.partialorder %v205_v37, 0.0  ;;  %v209_v40 = vmul.f32 0.2, %v205_v37 }
 0x14a   :  { %v215_v42 = vsel %vm214_vm5, %v212_v39, -inf }
 0x14b   :  { %216 = vmax.xlane.f32.xlu1 %v215_v42  ;;  %v211_v43 = vsel %vm207_vm6, %v205_v37, %v209_v40 }
 0x14c   :  { %v213_v44 = vadd.f32 %v211_v43, %v1112_v41 }
 0x14e   :  { %v218_v45 = vsel %vm214_vm5, %v213_v44, -inf }
 0x14f   :  { %219 = vmax.xlane.f32.xlu1 %v218_v45 }
 0x160   :  { %240 = vrot.lane.b32.xlu1 %v1094_v20, %s1012_s10 }
 0x1d4   :  { %v217_v47 = vpop.xlane.xlu1 %216 }
 0x1d5   :  { %v221_v48 = vsub.f32 %v212_v39, %v217_v47 }
 0x1d7   :  { %v223_v49 = vmul.f32 1.442695, %v221_v48 }
 0x1d8   :  { %v220_v50 = vpop.xlane.xlu1 %219 }
 0x1d9   :  { %951 = vpow2.f32 %v223_v49  ;;  %v222_v51 = vsub.f32 %v213_v44, %v220_v50 }
 0x1db   :  { %v225_v52 = vmul.f32 1.442695, %v222_v51 }
 0x1dc   :  { %v241_v53 = vpop.permute.xlu1 %240 }
 0x1dd   :  { %953 = vpow2.f32 %v225_v52  ;;  %883 = vmatmul.mubr.msk.bf16.vlgmr.msra.gmra.mxu1 %vm242_vm3, %v241_v53 }
 0x1de   :  { %893 = vmatpush3.bf16.msra.mxu1 %v1094_v20  ;;  %894 = vmatprep.mubr.msk.bf16.mxu1 %vm1010_vm1, %v1009_v1 }
 0x1df   :  { %904 = vmatprep.subr.bf16.mxu1 %v1009_v1 }
 0x1e6   :  { %v952_v54 = vpop.eup %951 }
 0x1e7   :  { %v227_v55 = vsel %vm214_vm5, %v952_v54, 0.0 }
 0x1e8   :  { %228 = vadd.xlane.f32.xlu0 %v227_v55 }
 0x1ea   :  { %v954_v56 = vpop.eup %953 }
 0x1eb   :  { %v230_v57 = vsel %vm214_vm5, %v954_v56, 0.0 }
 0x1ec   :  { %231 = vadd.xlane.f32.xlu1 %v230_v57 }
 0x1fd   :  { %505 = vrot.lane.b32.xlu1 %v1096_v23, %s1014_s1 }
 0x1fe   :  { %414 = vperm.xlu0 %946, %v1091_v15  }
 0x201   :  { %503 = vrot.lane.b32.xlu1 %v1094_v20, %s1015_s11 }
 0x205   :  { %410 = vperm.xlu1 %945, %v1088_v11  }
 0x271   :  { %v229_v58 = vpop.xlane.xlu0 %228 }
 0x272   :  { %955 = vrcp.f32 %v229_v58 }
 0x275   :  { %v232_v59 = vpop.xlane.xlu1 %231 }
 0x276   :  { %957 = vrcp.f32 %v232_v59 }
 0x279   :  { %v415_v60 = vpop.permute.xlu0 %414  ;;  %v506_v7 = vpop.permute.xlu1 %505 }
 0x27a   :  { %v422_v61 = vadd.f32 %v1098_v25, %v415_v60  ;;  %v511_v9 = vsel %vm242_vm3, %v506_v7, 0 }
 0x27c   :  { %vm424_vm7 = vcmp.gt.f32.partialorder %v422_v61, 0.0  ;;  %v426_v62 = vmul.f32 0.2, %v422_v61 }
 0x27d   :  { %v504_v10 = vpop.permute.xlu1 %503 }
 0x27e   :  { %v428_v63 = vsel %vm424_vm7, %v422_v61, %v426_v62 }
 0x27f   :  { %v1134_v0 = vadd.f32 %v428_v63, %v1112_v41  ;;  %v956_v2 = vpop.eup %955 }
 0x280   :  { %v235_v5 = vmul.f32 %v956_v2, %v952_v54 }
 0x281   :  { %v434_v3 = vsel %vm214_vm5, %v1134_v0, -inf  ;;  %v411_v11 = vpop.permute.xlu1 %410 }
 0x282   :  { %435 = vmax.xlane.f32.xlu0 %v434_v3  ;;  %v421_v12 = vadd.f32 %v1098_v25, %v411_v11 }
 0x283   :  { %v958_v4 = vpop.eup %957 }
 0x284   :  { %v236_v6 = vmul.f32 %v958_v4, %v954_v56  ;;  %v425_v15 = vmul.f32 0.2, %v421_v12  ;;  %vm423_vm8 = vcmp.gt.f32.partialorder %v421_v12, 0.0 }
 0x286   :  { %v237_v8 = vpack.c.bf16 %v236_v6, %v235_v5  ;;  %v427_v24 = vsel %vm423_vm8, %v421_v12, %v425_v15 }
 0x287   :  { %v429_v25 = vadd.f32 %v427_v24, %v1106_v35 }
 0x288   :  { %895 = vmatmul.mubr.msk.bf16.vlgmr.msra.gmra.mxu1 %vm214_vm5, %v237_v8 }
 0x289   :  { %905 = vmatpush3.bf16.xpose.msra.mxu1 %v511_v9  ;;  %906 = vmatprep.mubr.msk.bf16.mxu1 %vm1010_vm1, %v1009_v1  ;;  %v431_v28 = vsel %vm214_vm5, %v429_v25, -inf }
 0x28a   :  { %916 = vmatprep.subr.mxu1 %v1009_v1 }
 0x290   :  { %907 = vmatmul.mubr.msk.bf16.vlgmr.msra.gmra.mxu1 %vm242_vm3, %v504_v10 }
 0x291   :  { %926 = vmatprep.mubr.msk.f32.mxu1 %vm1010_vm1, %v1009_v1 }
 0x298   :  { %318 = vrot.lane.b32.xlu0 %v1096_v23, %s1012_s10 }
 0x29d   :  { %v283_v13 = vpop.f32.mrf.mxu1 }
 0x29e   :  { %v290_v14 = vmul.f32 0.17677669, %v283_v13 }
 0x29f   :  { %v884_v16 = vpop.f32.mrf.mxu1 }
 0x2a0   :  { %v292_v17 = vadd.f32 %v290_v14, %v1106_v35 }
 0x2a1   :  { %v286_v18 = vpop.f32.mrf.mxu1 }
 0x2a2   :  { %v291_v19 = vmul.f32 0.17677669, %v286_v18  ;;  %v294_v21 = vsel %vm214_vm5, %v292_v17, -inf }
 0x2a3   :  { %295 = vmax.xlane.f32.xlu1 %v294_v21  ;;  %v885_v22 = vpop.f32.mrf.mxu1 }
 0x2a4   :  { %v293_v26 = vadd.f32 %v291_v19, %v1112_v41 }
 0x2a6   :  { %v297_v27 = vsel %vm214_vm5, %v293_v26, -inf }
 0x2a7   :  { %298 = vmax.xlane.f32.xlu1 %v297_v27 }
 0x2ab   :  { %432 = vmax.xlane.f32.xlu1 %v431_v28  ;;  %v636_v28 = vld [vmem:[%s1229_s6 + $0x18] sm:$0xff] }
 0x30b   :  { %v436_v29 = vpop.xlane.xlu0 %435 }
 0x30c   :  { %v438_v46 = vsub.f32 %v1134_v0, %v436_v29  ;;  %v635_v29 = vld [vmem:[%s1229_s6 + $0x10] sm:$0xff] }
 0x30e   :  { %v441_v52 = vmul.f32 1.442695, %v438_v46 }
 0x30f   :  { %v319_v30 = vpop.permute.xlu0 %318 }
 0x310   :  { %887 = vmatpush3.bf16.msra.mxu0 %v319_v30  ;;  %v633_v30 = vld [vmem:[%s1229_s6] sm:$0xff] }
 0x311   :  { %898 = vmatprep.subr.bf16.mxu0 %v1009_v1 }
 0x32c   :  { %v296_v31 = vpop.xlane.xlu1 %295 }
 0x32d   :  { %v300_v33 = vsub.f32 %v292_v17, %v296_v31  ;;  %v632_v31 = vld [vmem:[%s1226_s3] sm:$0x3] }
 0x32f   :  { %v302_v36 = vmul.f32 1.442695, %v300_v33 }
 0x330   :  { %v299_v32 = vpop.xlane.xlu1 %298 }
 0x331   :  { %v301_v37 = vsub.f32 %v293_v26, %v299_v32  ;;  %959 = vpow2.f32 %v302_v36 }
 0x333   :  { %v304_v42 = vmul.f32 1.442695, %v301_v37 }
 0x334   :  { %v433_v38 = vpop.xlane.xlu1 %432 }
 0x335   :  { %v437_v43 = vsub.f32 %v429_v25, %v433_v38  ;;  %961 = vpow2.f32 %v304_v42  ;;  %v637_v25 = vld [vmem:[%s1229_s6 + $0x20] sm:$0x1] }
 0x336   :  { %917 = vmatpush3.msk.msra.mxu1 %vm642_vm9, %v637_v25 }
 0x337   :  { %v439_v47 = vmul.f32 1.442695, %v437_v43  ;;  %918 = vmatprep.subr.mxu1 %v1009_v1 }
 0x338   :  { %919 = vmatpush3.msra.mxu1 %v636_v28 }
 0x339   :  { %963 = vpow2.f32 %v439_v47  ;;  %920 = vmatprep.subr.mxu1 %v1009_v1 }
 0x33a   :  { %965 = vpow2.f32 %v441_v52  ;;  %921 = vmatpush3.msra.mxu1 %v635_v29 }
 0x33b   :  { %922 = vmatprep.subr.mxu1 %v1009_v1 }
 0x33e   :  { %v960_v58 = vpop.eup %959 }
 0x33f   :  { %v306_v59 = vsel %vm214_vm5, %v960_v58, 0.0 }
 0x342   :  { %v962_v60 = vpop.eup %961 }
 0x346   :  { %v964_v61 = vpop.eup %963 }
 0x347   :  { %v443_v62 = vsel %vm214_vm5, %v964_v61, 0.0  ;;  %v966_v63 = vpop.eup %965 }
 0x348   :  { %v1156_v34 = vpop.f32.mrf.mxu1  ;;  %v446_v0 = vsel %vm214_vm5, %v966_v63, 0.0 }
 0x34a   :  { %v896_v39 = vpop.f32.mrf.mxu1 }
 0x34c   :  { %v1158_v40 = vpop.f32.mrf.mxu1 }
 0x34e   :  { %v897_v44 = vpop.f32.mrf.mxu1 }
 0x350   :  { %v547_v45 = vpop.f32.mrf.mxu1 }
 0x351   :  { %v554_v48 = vmul.f32 0.17677669, %v547_v45 }
 0x352   :  { %v908_v49 = vpop.f32.mrf.mxu1 }
 0x353   :  { %v556_v50 = vadd.f32 %v554_v48, %v1106_v35  ;;  %v309_v35 = vsel %vm214_vm5, %v962_v60, 0.0 }
 0x354   :  { %v550_v51 = vpop.f32.mrf.mxu1 }
 0x355   :  { %v555_v53 = vmul.f32 0.17677669, %v550_v51  ;;  %v558_v54 = vsel %vm214_vm5, %v556_v50, -inf }
 0x356   :  { %v909_v55 = vpop.f32.mrf.mxu1  ;;  %559 = vmax.xlane.f32.xlu1 %v558_v54 }
 0x357   :  { %v557_v56 = vadd.f32 %v555_v53, %v1112_v41 }
 0x359   :  { %v561_v57 = vsel %vm214_vm5, %v557_v56, -inf }
 0x35a   :  { %562 = vmax.xlane.f32.xlu1 %v561_v57 }
 0x35e   :  { %307 = vadd.xlane.f32.xlu1 %v306_v59 }
 0x362   :  { %310 = vadd.xlane.f32.xlu1 %v309_v35 }
 0x366   :  { %444 = vadd.xlane.f32.xlu1 %v443_v62 }
 0x36a   :  { %447 = vadd.xlane.f32.xlu1 %v446_v0 }
 0x37b   :  { %454 = vrot.lane.b32.xlu1 %v1094_v20, %s1014_s1 }
 0x3df   :  { %v560_v41 = vpop.xlane.xlu1 %559 }
 0x3e0   :  { %v564_v2 = vsub.f32 %v556_v50, %v560_v41 }
 0x3e2   :  { %v566_v3 = vmul.f32 1.442695, %v564_v2 }
 0x3e3   :  { %v563_v4 = vpop.xlane.xlu1 %562 }
 0x3e4   :  { %967 = vpow2.f32 %v566_v3  ;;  %v565_v5 = vsub.f32 %v557_v56, %v563_v4 }
 0x3e6   :  { %v568_v6 = vmul.f32 1.442695, %v565_v5 }
 0x3e7   :  { %v308_v7 = vpop.xlane.xlu1 %307 }
 0x3e8   :  { %969 = vpow2.f32 %v568_v6 }
 0x3e9   :  { %971 = vrcp.f32 %v308_v7 }
 0x3eb   :  { %v311_v8 = vpop.xlane.xlu1 %310 }
 0x3ec   :  { %973 = vrcp.f32 %v311_v8 }
 0x3ef   :  { %v445_v9 = vpop.xlane.xlu1 %444 }
 0x3f0   :  { %975 = vrcp.f32 %v445_v9 }
 0x3f1   :  { %v968_v10 = vpop.eup %967 }
 0x3f2   :  { %v570_v11 = vsel %vm214_vm5, %v968_v10, 0.0 }
 0x3f3   :  { %571 = vadd.xlane.f32.xlu1 %v570_v11  ;;  %v448_v12 = vpop.xlane.xlu1 %447 }
 0x3f4   :  { %977 = vrcp.f32 %v448_v12 }
 0x3f5   :  { %v970_v20 = vpop.eup %969 }
 0x3f6   :  { %v573_v13 = vsel %vm214_vm5, %v970_v20, 0.0  ;;  %v972_v14 = vpop.eup %971 }
 0x3f7   :  { %574 = vadd.xlane.f32.xlu1 %v573_v13  ;;  %v314_v16 = vmul.f32 %v972_v14, %v960_v58  ;;  %v455_v19 = vpop.permute.xlu1 %454 }
 0x3f9   :  { %v974_v15 = vpop.eup %973 }
 0x3fa   :  { %v315_v17 = vmul.f32 %v974_v15, %v962_v60 }
 0x3fc   :  { %v316_v18 = vpack.c.bf16 %v315_v17, %v314_v16 }
 0x3fd   :  { %v976_v21 = vpop.eup %975 }
 0x3fe   :  { %889 = vmatmul.mubr.msk.bf16.vlgmr.msra.gmra.mxu0 %vm214_vm5, %v316_v18  ;;  %v451_v24 = vmul.f32 %v976_v21, %v964_v61 }
 0x3ff   :  { %899 = vmatpush3.bf16.msra.mxu0 %v455_v19  ;;  %900 = vmatprep.mubr.msk.bf16.mxu0 %vm1010_vm1, %v1009_v1 }
 0x400   :  { %910 = vmatprep.subr.bf16.mxu0 %v1009_v1 }
 0x401   :  { %v978_v22 = vpop.eup %977 }
 0x402   :  { %v452_v26 = vmul.f32 %v978_v22, %v966_v63 }
 0x404   :  { %v453_v27 = vpack.c.bf16 %v452_v26, %v451_v24 }
 0x406   :  { %901 = vmatmul.mubr.msk.bf16.vlgmr.msra.gmra.mxu0 %vm214_vm5, %v453_v27 }
 0x407   :  { %912 = vmatprep.mubr.msk.bf16.mxu0 %vm1010_vm1, %v1009_v1 }
 0x408   :  { %581 = vrot.lane.b32.xlu1 %v1096_v23, %s1015_s11  ;;  %v634_v23 = vld [vmem:[%s1229_s6 + $0x8] sm:$0xff] }
 0x409   :  { %923 = vmatpush3.msra.mxu1 %v634_v23 }
 0x40a   :  { %924 = vmatprep.subr.mxu1 %v1009_v1 }
 0x40b   :  { %925 = vmatpush3.msra.mxu1 %v633_v30 }
 0x40c   :  { %927 = vmatmul.mubr.msk.f32.vlgmr.msra.gmra.mxu1 %vm638_vm10, %v632_v31 }
 0x47c   :  { %v572_v32 = vpop.xlane.xlu1 %571 }
 0x47d   :  { %979 = vrcp.f32 %v572_v32 }
 0x480   :  { %v575_v33 = vpop.xlane.xlu1 %574 }
 0x481   :  { %981 = vrcp.f32 %v575_v33 }
 0x484   :  { %v582_v36 = vpop.permute.xlu1 %581 }
 0x485   :  { %911 = vmatpush3.bf16.msra.mxu0 %v582_v36 }
 0x486   :  { %929 = vmatprep.subr.mxu0 %v1009_v1 }
 0x48a   :  { %v980_v37 = vpop.eup %979 }
 0x48b   :  { %v578_v39 = vmul.f32 %v980_v37, %v968_v10 }
 0x48e   :  { %v982_v38 = vpop.eup %981 }
 0x48f   :  { %v579_v42 = vmul.f32 %v982_v38, %v970_v20 }
 0x491   :  { %v580_v43 = vpack.c.bf16 %v579_v42, %v578_v39 }
 0x493   :  { %913 = vmatmul.mubr.msk.bf16.vlgmr.msra.gmra.mxu0 %vm214_vm5, %v580_v43 }
 0x494   :  { %933 = vmatprep.mubr.msk.f32.mxu0 %vm1010_vm1, %v1009_v1 }
 0x4be   :  { %v358_v44 = vpop.f32.mrf.mxu0 }
 0x4bf   :  { %v403_v48 = vadd.f32 %v1156_v34, %v358_v44 }
 0x4c0   :  { %v890_v45 = vpop.f32.mrf.mxu0 }
 0x4c2   :  { %v361_v46 = vpop.f32.mrf.mxu0 }
 0x4c3   :  { %v406_v52 = vadd.f32 %v1158_v40, %v361_v46  ;;  %v716_v40 = vld [vmem:[%s1225_s2] sm:$0x3]  ;;  %s816_s2 = sshll.u32 %s1016_s24, 4  ;;  %s817_s2 = int_to_ptr.vmem [resolvable:$true] %s816_s2 }
 0x4c4   :  { %v891_v47 = vpop.f32.mrf.mxu0  ;;  %s987_s25 = scalar_lea.vmem %s817_s2, 32  ;;  %p992_p1 = scmp.lt.s32.totalorder %s817_s2, %s817_s2 }
 0x4c5   :  { %p988_p0 = scmp.ne.s32.totalorder %s817_s2, %s987_s25  ;;  %p993_p2 = scmp.lt.s32.totalorder %s987_s25, %s987_s25 }
 0x4c6   :  { %v494_v49 = vpop.f32.mrf.mxu0 }
 0x4c7   :  { %v501_v50 = vadd.f32 %v494_v49, %v403_v48  ;;  %p994_p3 = por %p993_p2, %p992_p1 }
 0x4c8   :  { %v902_v51 = vpop.f32.mrf.mxu0 }
 0x4c9   :  { %p995_p4 = pnand %p994_p3, %p988_p0 }
 0x4ca   :  { %v497_v53 = vpop.f32.mrf.mxu0 }
 0x4cb   :  { %v502_v54 = vadd.f32 %v497_v53, %v406_v52 }
 0x4cc   :  { %v903_v55 = vpop.f32.mrf.mxu0  ;;  %v712_v56 = vpop.f32.mrf.mxu1 }
 0x4ce   :  { %v928_v57 = vpop.f32.mrf.mxu1 }
 0x553   :  { %v621_v58 = vpop.f32.mrf.mxu0 }
 0x554   :  { %v628_v62 = vadd.f32 %v621_v58, %v501_v50 }
 0x555   :  { %v914_v59 = vpop.f32.mrf.mxu0 }
 0x556   :  { %v630_v34 = vmul.f32 0.5, %v628_v62 }
 0x557   :  { %v624_v60 = vpop.f32.mrf.mxu0 }
 0x558   :  { %v629_v35 = vadd.f32 %v624_v60, %v502_v54 }
 0x559   :  { %v915_v61 = vpop.f32.mrf.mxu0 }
 0x55a   :  { %v631_v63 = vmul.f32 0.5, %v629_v35 }
 0x55c   :  { %930 = vmatpush3.xpose.msk.msra.mxu0 %vm242_vm3, %v631_v63 }
 0x55d   :  { %931 = vmatprep.subr.mxu0 %v1009_v1 }
 0x560   :  { %932 = vmatpush3.xpose.msk.msra.mxu0 %vm242_vm3, %v630_v34 }
 0x563   :  { %934 = vmatmul.mubr.msk.f32.vlgmr.msra.gmra.mxu0 %vm242_vm3, %v712_v56 }
 0x623   :  { %v792_v0 = vpop.f32.mrf.mxu0 }
 0x624   :  { %v793_v41 = vadd.f32 %v792_v0, %v716_v40 }
 0x625   :  { %v935_v2 = vpop.f32.mrf.mxu0 }
 0x626   :  { %v797_v3 = vsel %vm796_vm11, %v793_v41, -inf }
 0x627   :  { %798 = vmax.xlane.f32.xlu0 %v797_v3 }
 0x6b0   :  { %v799_v4 = vpop.xlane.xlu0 %798 }
 0x6b1   :  { %v800_v5 = vsub.f32 %v793_v41, %v799_v4 }
 0x6b3   :  { %v801_v6 = vmul.f32 1.442695, %v800_v5 }
 0x6b5   :  { %983 = vpow2.f32 %v801_v6 }
 0x6c2   :  { %v984_v1 = vpop.eup %983 }
 0x6c3   :  { %v803_v7 = vsel %vm796_vm11, %v984_v1, 0.0 }
 0x6c4   :  { %804 = vadd.xlane.f32.xlu1 %v803_v7 }
 0x74d   :  { %v805_v8 = vpop.xlane.xlu1 %804 }
 0x74e   :  { %985 = vlog2.f32 %v805_v8 }
 0x75b   :  { %v986_v9 = vpop.eup %985 }
 0x75c   :  { %v807_v10 = vmul.f32 0.6931472, %v986_v9 }
 0x75e   :  { %v808_v11 = vsub.f32 %v800_v5, %v807_v10 }
 0x760   :  { %809 = vst.msk [vmem:[#allocation2] sm:$0x3] %vm796_vm11, %v808_v11 }
 0x761   :  { %998 = shalt.err (!%p995_p4)
}
 0x762   :  { %819 = dma.vmem_to_hbm [thread:$0]  %s817_s2, 32, %s1230_s7, [#allocation3]  }
 0x763   :  { %1007 = dma.done.wait [#allocation3], 32  }
 0x764   :  { %1008 = vsyncadd [#allocation3], 4294967264 }
 0x765   :  { %823 = vsyncpa [#allocation3], 1 }

</bundles_post_ra>
